<compile_context>
chip_gen: v6e
topology: v6e:2x2x1
jax: 0.10.0
libtpu: 0.0.40
codegen_flags: <defaults>
</compile_context>

<pallas_src>
import jax
import jax.numpy as jnp
from jax.experimental import pallas as pl
from jax.experimental.pallas import tpu as pltpu


def _fused_affine_kernel(x_ref, w_ref, b_ref, o_ref):
    # x_ref: [TM, pack*(S+1)]  w_ref: [pack*(S+1), pack*H]  b_ref: [1, pack*H]
    o_ref[...] = (jnp.dot(x_ref[...], w_ref[...],
                          preferred_element_type=jnp.float32)
                  + b_ref[...]).astype(o_ref.dtype)


def state_extractor_pallas(arm, gripper, params, *, tm=None):
    """arm: [bs, seq, state_dim], gripper: [bs, seq, 1] -> [bs, seq, hidden]."""
    bs, seq, state_dim = arm.shape
    hidden = params["w_arm"].shape[1]
    n = bs * seq
    k_in = state_dim + 1

    # ---- fold the three Linears into one affine map (trace-time, outside kernel) ----
    w_fc_a = params["w_fc"][:hidden, :]                  # consumes 'arm' half of concat
    w_fc_g = params["w_fc"][hidden:, :]                  # consumes 'gripper' half
    w_comb = jnp.concatenate([params["w_arm"] @ w_fc_a,
                              params["w_grip"] @ w_fc_g], axis=0)        # [S+1, H]
    b_comb = (params["b_arm"] @ w_fc_a + params["b_grip"] @ w_fc_g
              + params["b_fc"]).reshape(1, hidden)                       # [1, H]

    # gripper becomes one extra input column of x
    x = jnp.concatenate([arm.reshape(n, state_dim),
                         gripper.reshape(n, 1)], axis=-1)                # [N, S+1]

    # ---- lane-dense packing: fuse `pack` rows so the output width is 128 ----
    pack = 128 // hidden if (hidden < 128 and 128 % hidden == 0) else 1
    n_p = -(-n // pack)                                   # packed rows needed

    # ---- row-tile selection: big tiles, but keep >=2 grid steps (v7x 2 TCs) ----
    if tm is None:
        half = -(-n_p // 2)                               # ~half the packed rows / step
        tm = min(1024, max(8, -(-half // 8) * 8))         # multiple of 8, VMEM-safe
    grid = pl.cdiv(n_p, tm)
    n_p_pad = grid * tm
    n_pad = n_p_pad * pack

    if n_pad != n:
        x = jnp.pad(x, ((0, n_pad - n), (0, 0)))          # zero-pad extra rows
    x_p = x.reshape(n_p_pad, pack * k_in)                 # free row-major reshape

    if pack > 1:
        w_block = jnp.kron(jnp.eye(pack, dtype=w_comb.dtype), w_comb)    # block-diag
        b_block = jnp.tile(b_comb, (1, pack))
    else:
        w_block, b_block = w_comb, b_comb
    out_w = pack * hidden

    out_p = pl.pallas_call(
        _fused_affine_kernel,
        out_shape=jax.ShapeDtypeStruct((n_p_pad, out_w), arm.dtype),
        grid_spec=pltpu.PrefetchScalarGridSpec(
            num_scalar_prefetch=0,
            grid=(grid,),
            in_specs=[
                pl.BlockSpec((tm, pack * k_in), lambda i: (i, 0)),       # packed rows
                pl.BlockSpec((pack * k_in, out_w), lambda i: (0, 0)),    # folded weight
                pl.BlockSpec((1, out_w), lambda i: (0, 0)),              # folded bias
            ],
            out_specs=pl.BlockSpec((tm, out_w), lambda i: (i, 0)),
        ),
        compiler_params=pltpu.CompilerParams(
            dimension_semantics=("parallel",)),
    )(x_p, w_block, b_block)

    out = out_p.reshape(n_pad, hidden)[:n]                # free reshape + drop padding
    return out.reshape(bs, seq, hidden)


def init_params(key, state_dim, hidden):
    """Deterministic init mirroring nn.Linear's U(-1/sqrt(fan_in), 1/sqrt(fan_in))."""
    ks = jax.random.split(key, 6)
    u = lambda k, shape, fan_in: jax.random.uniform(
        k, shape, jnp.float32, -1.0 / jnp.sqrt(fan_in), 1.0 / jnp.sqrt(fan_in))
    return {
        # stored as [in, out] (transpose of PyTorch's [out, in])
        "w_arm": u(ks[0], (state_dim, hidden), state_dim),
        "b_arm": u(ks[1], (hidden,), state_dim),
        "w_grip": u(ks[2], (1, hidden), 1),
        "b_grip": u(ks[3], (hidden,), 1),
        "w_fc": u(ks[4], (2 * hidden, hidden), 2 * hidden),
        "b_fc": u(ks[5], (hidden,), 2 * hidden),
    }


def state_extractor_ref(arm, gripper, params):
    emb_arm = arm @ params["w_arm"] + params["b_arm"]
    emb_grip = gripper @ params["w_grip"] + params["b_grip"]
    emb = jnp.concatenate([emb_arm, emb_grip], axis=-1)
    return emb @ params["w_fc"] + params["b_fc"]


if __name__ == "__main__":
    bs, seq, state_dim, hidden = 2, 8, 4, 32

    key = jax.random.PRNGKey(0)
    k_arm, k_grip, k_params = jax.random.split(key, 3)

    arm = jax.random.normal(k_arm, (bs, seq, state_dim), jnp.float32)
    gripper = jax.random.normal(k_grip, (bs, seq, 1), jnp.float32)
    params = init_params(k_params, state_dim, hidden)

    out = jax.block_until_ready(state_extractor_pallas(arm, gripper, params))
    ref = state_extractor_ref(arm, gripper, params)

    assert out.shape == (bs, seq, hidden)
    # folded weights differ from the reference only by f32 re-association rounding
    assert jnp.allclose(out, ref, atol=1e-5, rtol=1e-5)
    print("KERNEL_OK")
</pallas_src>

<mosaic_0001>
module attributes {stable_mosaic.version = 11 : i64} {
  func.func @_fused_affine_kernel(%arg0: i32, %arg1: memref<8x20xf32, #tpu.memory_space<vmem>>, %arg2: memref<20x128xf32, #tpu.memory_space<vmem>>, %arg3: memref<1x128xf32, #tpu.memory_space<vmem>>, %arg4: memref<8x128xf32, #tpu.memory_space<vmem>>) attributes {dimension_semantics = [#tpu.dimension_semantics<parallel>], iteration_bounds = array<i64: 1>, scalar_prefetch = 0 : i64, scratch_operands = 0 : i64, tpu.core_type = #tpu.core_type<tc>, window_params = [{transform_indices = @transform_0, window_bounds = array<i64: 8, 20>}, {pipeline_mode = #tpu.pipeline_mode<synchronous>, transform_indices = @transform_1, window_bounds = array<i64: 20, 128>}, {pipeline_mode = #tpu.pipeline_mode<synchronous>, transform_indices = @transform_2, window_bounds = array<i64: 1, 128>}, {transform_indices = @transform_3, window_bounds = array<i64: 8, 128>}]} {
    %c0 = arith.constant 0 : index
    %c0_0 = arith.constant 0 : index
    %0 = vector.load %arg1[%c0, %c0_0] : memref<8x20xf32, #tpu.memory_space<vmem>>, vector<8x20xf32>
    %c0_1 = arith.constant 0 : index
    %c0_2 = arith.constant 0 : index
    %1 = vector.load %arg2[%c0_1, %c0_2] : memref<20x128xf32, #tpu.memory_space<vmem>>, vector<20x128xf32>
    %cst = arith.constant dense<0.000000e+00> : vector<8x128xf32>
    %2 = tpu.matmul %0, %1, %cst {dimension_numbers = #tpu.dot_dimension_numbers<[1], [0], [0], [1], [0, 0, 1, 1], [], []>} : vector<8x20xf32>, vector<20x128xf32>, vector<8x128xf32> -> vector<8x128xf32>
    %c0_3 = arith.constant 0 : index
    %c0_4 = arith.constant 0 : index
    %3 = vector.load %arg3[%c0_3, %c0_4] : memref<1x128xf32, #tpu.memory_space<vmem>>, vector<1x128xf32>
    %4 = vector.broadcast %3 : vector<1x128xf32> to vector<8x128xf32>
    %5 = arith.addf %2, %4 : vector<8x128xf32>
    %c0_5 = arith.constant 0 : index
    %c0_6 = arith.constant 0 : index
    %6 = vector.load %arg4[%c0_5, %c0_6] : memref<8x128xf32, #tpu.memory_space<vmem>>, vector<8x128xf32>
    tpu.vector_store %arg4[%c0_5, %c0_6], %5 {strides = array<i32>} : memref<8x128xf32, #tpu.memory_space<vmem>>, vector<8x128xf32>,
    return
  }
  func.func @transform_0(%arg0: i32) -> (i32, i32) {
    %c0_i32 = arith.constant 0 : i32
    %c0_i32_0 = arith.constant 0 : i32
    return %arg0, %c0_i32 : i32, i32
  }
  func.func @transform_1(%arg0: i32) -> (i32, i32) {
    %c0_i32 = arith.constant 0 : i32
    %c0_i32_0 = arith.constant 0 : i32
    %c0_i32_1 = arith.constant 0 : i32
    return %c0_i32, %c0_i32_0 : i32, i32
  }
  func.func @transform_2(%arg0: i32) -> (i32, i32) {
    %c0_i32 = arith.constant 0 : i32
    %c0_i32_0 = arith.constant 0 : i32
    %c0_i32_1 = arith.constant 0 : i32
    return %c0_i32, %c0_i32_0 : i32, i32
  }
  func.func @transform_3(%arg0: i32) -> (i32, i32) {
    %c0_i32 = arith.constant 0 : i32
    %c0_i32_0 = arith.constant 0 : i32
    return %arg0, %c0_i32 : i32, i32
  }
}

</mosaic_0001>

<bundles_post_ra>
// kernel: tpu_custom_call.1
= control target key start
LH: loop header
LB: loop body
LE: loop exit
PB: predicated region body
PF: predicated region fallthrough
CT: control target
= control target key end

     0   :  { %8 = vsyncpa [#allocation3], 0  ;;  %s275_s0 = inlined_call_operand.hbm [shape: f32[8,20], index: 0, kind: input, shape index: {}]   ;;  %s276_s1 = inlined_call_operand.hbm [shape: f32[20,128], index: 1, kind: input, shape index: {}]   ;;  %s277_s2 = inlined_call_operand.vmem [shape: f32[1,128], index: 2, kind: input, shape index: {}]   ;;  %s278_s3 = inlined_call_operand.hbm [shape: f32[8,128], index: 3, kind: output, shape index: {}]  }
   0x1   :  { %9 = vsyncpa [#allocation6], 0 }
   0x2   :  { %10 = vsyncpa [#allocation4], 0  ;;  %s236_s12 = smov [#allocation2]   ;;  %s237_s14 = smov [#allocation5]  }
   0x3   :  { %s17_s13 = sshll.u32 %s236_s12, 4  ;;  %s26_s15 = sshll.u32 %s237_s14, 4  ;;  %s18_s13 = int_to_ptr.vmem [resolvable:$true] %s17_s13  ;;  %s27_s15 = int_to_ptr.vmem [resolvable:$true] %s26_s15 }
   0x4   :  { %s178_s16 = scalar_lea.vmem %s18_s13, 128  ;;  %p183_p1 = scmp.lt.s32.totalorder %s18_s13, %s18_s13 }
   0x5   :  { %p179_p0 = scmp.ne.s32.totalorder %s18_s13, %s178_s16  ;;  %p184_p2 = scmp.lt.s32.totalorder %s178_s16, %s178_s16 }
   0x7   :  { %p185_p3 = por %p184_p2, %p183_p1 }
   0x9   :  { %p186_p4 = pnand %p185_p3, %p179_p0 }
   0xb   :  { %189 = shalt.err (!%p186_p4)
}
   0xc   :  { %20 = dma.hbm_to_vmem [thread:$0]  %s275_s0, 128, %s18_s13, [#allocation3]  }
   0xd   :  { %s198_s19 = scalar_lea.vmem %s27_s15, 384  ;;  %p203_p6 = scmp.lt.s32.totalorder %s27_s15, %s27_s15 }
   0xe   :  { %p199_p5 = scmp.ne.s32.totalorder %s27_s15, %s198_s19  ;;  %p204_p7 = scmp.lt.s32.totalorder %s198_s19, %s198_s19 }
  0x10   :  { %p205_p8 = por %p204_p7, %p203_p6 }
  0x12   :  { %p206_p9 = pnand %p205_p8, %p199_p5 }
  0x14   :  { %209 = shalt.err (!%p206_p9)
}
  0x15   :  { %s238_s20 = smov 128   ;;  %s239_s21 = smov 8  }
  0x16   :  { %32 = dma.hbm_to_vmem [thread:$0]  %s276_s1, 384, %s27_s15, [#allocation6], %s238_s20, %s238_s20, %s239_s21  }
  0x17   :  { %230 = dma.done.wait [#allocation3], 128  }
  0x18   :  { %231 = vsyncadd [#allocation3], 4294967168 }
  0x19   :  { %232 = dma.done.wait [#allocation6], 384  }
  0x1a   :  { %233 = vsyncadd [#allocation6], 4294966912  ;;  %v240_v0 = vmov 0.0   ;;  %vm241_vm0 = vmmov 0   ;;  %vm56_vm1 = vcmask 1043456   ;;  %v43_v2 = vld [vmem:[#allocation5 + $0x8] sm:$0xff] }
  0x1b   :  { %154 = vmatprep.subr.mxu0 %v240_v0  ;;  %160 = vmatprep.mubr.msk.f32.mxu0 %vm241_vm0, %v240_v0  ;;  %v44_v1 = vld [vmem:[#allocation5 + $0x10] sm:$0xf]  ;;  %v42_v3 = vld [vmem:[#allocation5] sm:$0xff]  ;;  %v41_v4 = vld [vmem:[#allocation2] sm:$0xff]  ;;  %vm52_vm2 = vcmask 162816   ;;  %s242_s24 = smov [#allocation7]  }
  0x1c   :  { %155 = vmatpush3.msk.msra.mxu0 %vm56_vm1, %v44_v1  ;;  %v147_v5 = vld [vmem:[%s277_s2] ss:$0 sm:$0xff]  ;;  %s137_s25 = sshll.u32 %s242_s24, 4  ;;  %s138_s25 = int_to_ptr.vmem [resolvable:$true] %s137_s25 }
  0x1d   :  { %156 = vmatprep.subr.mxu0 %v240_v0  ;;  %s210_s26 = scalar_lea.vmem %s138_s25, 128  ;;  %p215_p11 = scmp.lt.s32.totalorder %s138_s25, %s138_s25 }
  0x1e   :  { %157 = vmatpush3.msra.mxu0 %v43_v2  ;;  %p211_p10 = scmp.ne.s32.totalorder %s138_s25, %s210_s26  ;;  %p216_p12 = scmp.lt.s32.totalorder %s210_s26, %s210_s26 }
  0x1f   :  { %158 = vmatprep.subr.mxu0 %v240_v0 }
  0x20   :  { %159 = vmatpush3.msra.mxu0 %v42_v3  ;;  %p217_p13 = por %p216_p12, %p215_p11 }
  0x21   :  { %161 = vmatmul.mubr.msk.f32.vlgmr.msra.gmra.mxu0 %vm52_vm2, %v41_v4 }
  0x22   :  { %p218_p0 = pnand %p217_p13, %p211_p10 }
  0xe1   :  { %v126_v6 = vpop.f32.mrf.mxu0 }
  0xe2   :  { %v127_v7 = vadd.f32 %v147_v5, %v126_v6 }
  0xe3   :  { %v162_v8 = vpop.f32.mrf.mxu0 }
  0xe4   :  { %130 = vst [vmem:[#allocation7] sm:$0xff] %v127_v7 }
  0xe5   :  { %221 = shalt.err (!%p218_p0)
}
  0xe6   :  { %140 = dma.vmem_to_hbm [thread:$0]  %s138_s25, 128, %s278_s3, [#allocation4]  }
  0xe7   :  { %234 = dma.done.wait [#allocation4], 128  }
  0xe8   :  { %235 = vsyncadd [#allocation4], 4294967168 }
  0xe9   :  { %144 = vsyncpa [#allocation3], 1 }
  0xea   :  { %145 = vsyncpa [#allocation6], 1 }
  0xeb   :  { %146 = vsyncpa [#allocation4], 1 }

</bundles_post_ra>
